<compile_context>
chip_gen: v5e
topology: v5e:2x2
jax: 0.10.0
libtpu: 0.0.40
codegen_flags: <defaults>
</compile_context>

<pallas_src>
import functools

import jax
import jax.numpy as jnp
from jax import lax
from jax.experimental import pallas as pl
from jax.experimental.pallas import tpu as pltpu

_LANE = 128


def _ceil_div(a, b):
    return -(-a // b)


def _round_up(a, b):
    return _ceil_div(a, b) * b


# -----------------------------------------------------------------------------
# Pallas kernel: fused 2-layer pointwise MLP (Conv1d k=1) + running max over samples.
# Channel-major: x_ref (k, c0, g), weights transposed, output (c2, g) lane-dense.
# -----------------------------------------------------------------------------
def _mlp_max_kernel(x_ref, w1_ref, b1_ref, w2_ref, b2_ref, o_ref):
    """o = relu( max_s( relu(W1^T x_s + b1)^T W2 ... )  + b2 ), channel-major tiles.

    x_ref : (k, c0, g) bf16      samples x channels(sublanes) x groups(lanes)
    w1_ref: (c0, c1, 1) f32      VPU path (c0 <= 8)   OR   (c1, c0) bf16 MXU path
    b1_ref: (c1, 1) f32
    w2_ref: (c2, c1) bf16
    b2_ref: (c2, 1) f32
    o_ref : (c2, g)              lane-dense output block
    """
    k, c0, g = x_ref.shape
    c1 = b1_ref.shape[0]
    c2 = o_ref.shape[0]
    small_cin = w1_ref.ndim == 3

    # Hoisted broadcasts: JAX does not CSE broadcast_in_dim, keep them out of the loop.
    b1_b = jnp.broadcast_to(b1_ref[...], (c1, g))                      # (c1, g) f32
    w2t = w2_ref[...]                                                  # (c2, c1) bf16
    if small_cin:
        # First layer as c0 broadcast multiply-adds on the VPU (contraction of 3..8
        # against a 128/256-wide systolic array would be ~1-2% MXU utilization).
        w1_b = [jnp.broadcast_to(w1_ref[j], (c1, g)) for j in range(c0)]
    else:
        w1t = w1_ref[...]                                              # (c1, c0) bf16

    def per_sample(s, acc):
        xs = x_ref[s]                                                  # (c0, g) bf16
        if small_cin:
            xf = xs.astype(jnp.float32)
            h = b1_b
            for j in range(c0):                                        # VPU FMAs
                h = h + xf[j:j + 1, :] * w1_b[j]
        else:
            h = jnp.dot(w1t, xs, preferred_element_type=jnp.float32) + b1_b
        h = jnp.maximum(h, 0.0)                                        # first ReLU stays
        y = jnp.dot(w2t, h.astype(jnp.bfloat16),
                    preferred_element_type=jnp.float32)                # (c2, g) f32
        return jnp.maximum(acc, y)                                     # running max (VPU)

    acc0 = jnp.full((c2, g), -jnp.inf, jnp.float32)
    acc = lax.fori_loop(0, k, per_sample, acc0,
                        unroll=True if k <= 16 else 4)                 # bounded unroll
    # b2 + second ReLU hoisted: max_s relu(z_s + b2) == relu(max_s z_s + b2) exactly.
    o_ref[...] = jnp.maximum(acc + b2_ref[...], 0.0).astype(o_ref.dtype)


# -----------------------------------------------------------------------------
# Generation-aware tiling.
# -----------------------------------------------------------------------------
@functools.lru_cache(maxsize=1)
def _gen_config():
    try:
        kind = jax.devices()[0].device_kind.lower()
    except Exception:  # pragma: no cover
        kind = ""
    if "v7" in kind:
        # 64 MiB VMEM, 2 TCs: conservative block budget, keep >=2 grid steps.
        return dict(block_vmem=8 << 20, vmem_limit=40 << 20, want_two_tiles=True)
    if "v6" in kind or "v5" in kind:
        # 128 MiB VMEM, 1 TC: bigger tiles, no forced split.
        return dict(block_vmem=16 << 20, vmem_limit=64 << 20, want_two_tiles=False)
    return dict(block_vmem=8 << 20, vmem_limit=40 << 20, want_two_tiles=True)


def _tile_plan(n_groups, k, c0, c1, c2, out_bytes, block_vmem_budget, want_two_tiles):
    """Groups-per-tile (multiple of 128 lanes) + padded lane extent."""
    strips_total = _ceil_div(n_groups, _LANE)
    # Live f32 vregs per 128-lane strip inside the sample loop (xs, h, y, acc);
    # ~1.5x for unrolled-iteration overlap; keep headroom inside the 64-vreg file.
    per_strip_vregs = _ceil_div(c0, 8) + _ceil_div(c1, 8) + 2 * _ceil_div(c2, 8)
    strips_by_vreg = max(1, int(48 / (1.5 * per_strip_vregs)))
    # Lane/sublane-PADDED VMEM footprint per strip: 2x-buffered bf16 x block + out block.
    per_strip_bytes = (2 * k * _round_up(c0, 16) * _LANE * 2
                       + 2 * _round_up(c2, 8) * _LANE * out_bytes)
    strips_by_vmem = max(1, block_vmem_budget // per_strip_bytes)
    strips = max(1, min(strips_total, strips_by_vreg, strips_by_vmem))
    if want_two_tiles and strips_total >= 2:
        strips = min(strips, max(1, strips_total // 2))   # >=2 grid steps for 2 TCs
    while strips > 1 and strips_total % strips:           # avoid over-padding the tail
        strips -= 1
    g = strips * _LANE
    return g, _round_up(n_groups, g)


def mlp_max_pallas(x_cm, w1, b1, w2, b2, out_dtype=jnp.bfloat16):
    """x_cm: (k, C_in, n_groups) channel-major.  Returns (C_out, n_groups) out_dtype."""
    k, c0, n_groups = x_cm.shape
    c1, c2 = w1.shape[1], w2.shape[1]
    cfg = _gen_config()
    g, n_pad = _tile_plan(n_groups, k, c0, c1, c2, jnp.dtype(out_dtype).itemsize,
                          cfg["block_vmem"], cfg["want_two_tiles"])

    small_cin = c0 <= 8
    if small_cin:
        w1x = w1.astype(jnp.float32)[:, :, None]          # (c0, c1, 1) VPU path
        w1_spec = pl.BlockSpec((c0, c1, 1), lambda i: (0, 0, 0))
    else:
        w1x = jnp.transpose(w1).astype(jnp.bfloat16)      # (c1, c0) MXU path
        w1_spec = pl.BlockSpec((c1, c0), lambda i: (0, 0))
    w2t = jnp.transpose(w2).astype(jnp.bfloat16)          # (c2, c1)
    b1_cm = b1.astype(jnp.float32)[:, None]                # (c1, 1)
    b2_cm = b2.astype(jnp.float32)[:, None]                # (c2, 1)

    x_cm = x_cm.astype(jnp.bfloat16)
    if n_pad != n_groups:                                  # pad groups (lane axis); padded
        x_cm = jnp.pad(x_cm, ((0, 0), (0, 0), (0, n_pad - n_groups)))  # cols sliced off below

    out = pl.pallas_call(
        _mlp_max_kernel,
        out_shape=jax.ShapeDtypeStruct((c2, n_pad), out_dtype),
        grid=(n_pad // g,),
        in_specs=[
            pl.BlockSpec((k, c0, g), lambda i: (0, 0, i)),
            w1_spec,                                       # weights stay VMEM-resident
            pl.BlockSpec((c1, 1), lambda i: (0, 0)),
            pl.BlockSpec((c2, c1), lambda i: (0, 0)),
            pl.BlockSpec((c2, 1), lambda i: (0, 0)),
        ],
        out_specs=pl.BlockSpec((c2, g), lambda i: (0, i)),
        compiler_params=pltpu.CompilerParams(
            dimension_semantics=("parallel",),
            vmem_limit_bytes=cfg["vmem_limit"],
        ),
    )(x_cm, w1x, b1_cm, w2t, b2_cm)
    return out[:, :n_groups]


def _mlp_max_reference(x_cm, w1, b1, w2, b2):
    """Pure-JAX reference of the fused kernel (channel-major), for a tolerance check."""
    x = x_cm.astype(jnp.bfloat16).astype(jnp.float32)      # match kernel input quantization
    h = jnp.maximum(jnp.einsum("cd,kcg->kdg", w1.astype(jnp.float32), x)
                    + b1[:, None], 0.0)
    y = jnp.maximum(jnp.einsum("de,kdg->keg", w2.astype(jnp.float32), h)
                    + b2[:, None], 0.0)
    return jnp.max(y, axis=0)                              # (c2, g)


# -----------------------------------------------------------------------------
# Plain-JAX glue: farthest point sampling, ball query, grouping.
# -----------------------------------------------------------------------------
def farthest_point_sample(xyz, n_out_point, key):
    """xyz: (B, N, 3) -> centroids (B, n_out_point, 3). random_start_point=True."""
    B, N, _ = xyz.shape
    start = jax.random.randint(key, (B,), 0, N).astype(jnp.int32)

    def body(i, carry):
        min_dist, idxs, farthest = carry
        idxs = idxs.at[:, i].set(farthest)
        cur = xyz[jnp.arange(B), farthest]                       # (B, 3)
        d = jnp.sum((xyz - cur[:, None, :]) ** 2, axis=-1)       # (B, N)
        min_dist = jnp.minimum(min_dist, d)
        farthest = jnp.argmax(min_dist, axis=-1).astype(jnp.int32)
        return (min_dist, idxs, farthest)

    init = (jnp.full((B, N), jnp.inf, jnp.float32),
            jnp.zeros((B, n_out_point), jnp.int32),
            start)
    _, idxs, _ = lax.fori_loop(0, n_out_point, body, init)
    return xyz[jnp.arange(B)[:, None], idxs]


def group_cm(x, centroid, n_sample, radius):
    """Ball query (first K in-ball points, index order) + gather + recenter + zero pad.

    Returns (K, C, B*S) bf16, sample-major channel-major, ready for the kernel.
    Padded (out-of-ball) rows are zero and still flow through the MLP + max, matching
    the reference (`x[group_padding] = 0.0` before mlp_conv).
    """
    B, N, C = x.shape
    S = centroid.shape[1]
    xyz = x[:, :, :3]
    d2 = jnp.sum((centroid[:, :, None, :] - xyz[:, None, :, :]) ** 2, axis=-1)  # (B,S,N)
    mask = d2 < radius * radius
    rank = jnp.cumsum(mask.astype(jnp.int32), axis=-1)            # 1-based hit rank
    valid = mask & (rank <= n_sample)
    slot = jnp.where(valid, rank - 1, n_sample)                   # overflow -> dump slot
    point_ids = jnp.broadcast_to(jnp.arange(N, dtype=jnp.int32), (B, S, N))
    b_ix = jnp.arange(B, dtype=jnp.int32)[:, None, None]
    s_ix = jnp.arange(S, dtype=jnp.int32)[None, :, None]
    sel = jnp.full((B, S, n_sample + 1), N, jnp.int32)
    sel = sel.at[b_ix, s_ix, slot].set(point_ids)                 # unique valid slots
    first_k = sel[:, :, :n_sample]                                # (B, S, K)
    padding = first_k >= N
    idx = jnp.where(padding, 0, first_k)
    gathered = x[jnp.arange(B)[:, None, None], idx]               # (B, S, K, C)
    recentered = jnp.concatenate(
        [gathered[..., :3] - centroid[:, :, None, :], gathered[..., 3:]], axis=-1)
    grouped = jnp.where(padding[..., None], 0.0, recentered).astype(jnp.bfloat16)
    # relayout to (K, C, B*S): channels on sublanes, groups on lanes for the kernel.
    # TODO(synk): fold this gather+relayout into the kernel (scalar-prefetch + DMA).
    return grouped.transpose(2, 3, 0, 1).reshape(n_sample, C, B * S)


# -----------------------------------------------------------------------------
# Model forward
# -----------------------------------------------------------------------------
def set_abstraction_msg(x, sa_cfg, sa_params, key):
    B, N, C = x.shape
    S = sa_cfg["n_out_point"]
    centroid = farthest_point_sample(x[:, :, :3], S, key)
    results = [centroid]
    for n_sample, radius, layer_p in zip(sa_cfg["n_sample"], sa_cfg["radius"], sa_params):
        x_cm = group_cm(x, centroid, n_sample, radius)            # (K, C, B*S) bf16
        w1, b1, w2, b2 = layer_p
        out_cm = mlp_max_pallas(x_cm, w1, b1, w2, b2,
                                out_dtype=jnp.bfloat16)           # (C_out, B*S)
        results.append(out_cm.reshape(-1, B, S).transpose(1, 2, 0).astype(jnp.float32))
    return jnp.concatenate(results, axis=2)                       # (B, S, 3 + sum(C_out))


def pointnetpp_msg_forward(x, config, params, key):
    keys = jax.random.split(key, len(config["set_abstractions"]))
    for sa_cfg, sa_params, kk in zip(config["set_abstractions"], params["sas"], keys):
        x = set_abstraction_msg(x, sa_cfg, sa_params, kk)
    # final MLP + global max over points (dim=1): reuse the fused kernel with k = S
    w1, b1, w2, b2 = params["final"]
    x_cm = x.transpose(1, 2, 0)                                   # (S, C, B) channel-major
    out_cm = mlp_max_pallas(x_cm, w1, b1, w2, b2, out_dtype=jnp.float32)   # (C_final, B)
    return out_cm.T                                               # (B, C_final)


# -----------------------------------------------------------------------------
# Deterministic parameter init
# -----------------------------------------------------------------------------
def init_mlp(key, layers):
    c0, c1, c2 = layers
    k1, k2 = jax.random.split(key)
    w1 = jax.random.normal(k1, (c0, c1), jnp.float32) / jnp.sqrt(c0)
    b1 = jnp.zeros((c1,), jnp.float32)
    w2 = jax.random.normal(k2, (c1, c2), jnp.float32) / jnp.sqrt(c1)
    b2 = jnp.zeros((c2,), jnp.float32)
    return (w1, b1, w2, b2)


def init_params(key, config):
    params = {"sas": []}
    for sa_cfg in config["set_abstractions"]:
        sa_params = []
        for layers in sa_cfg["mlp_layers"]:
            key, sub = jax.random.split(key)
            sa_params.append(init_mlp(sub, layers))
        params["sas"].append(sa_params)
    key, sub = jax.random.split(key)
    params["final"] = init_mlp(sub, config["final_mlp_layers"])
    return params


# -----------------------------------------------------------------------------
if __name__ == "__main__":
    CONFIG = dict(
        set_abstractions=[
            dict(n_out_point=16, n_sample=[8, 16], radius=[0.2, 0.4],
                 mlp_layers=[[3, 16, 32], [3, 16, 32]]),
            dict(n_out_point=4, n_sample=[8], radius=[0.4],
                 mlp_layers=[[67, 32, 64]]),
        ],
        final_mlp_layers=[67, 64, 128],
    )

    root = jax.random.PRNGKey(0)
    k_x, k_p, k_fps, k_chk = jax.random.split(root, 4)

    B, N = 2, 64
    x = jax.random.normal(k_x, (B, N, 3), jnp.float32)            # (batch, points, xyz)
    params = init_params(k_p, CONFIG)

    # Kernel vs pure-JAX reference sanity check (tolerances account for bf16 weights).
    w1, b1, w2, b2 = params["sas"][0][0]
    x_chk = jax.random.normal(k_chk, (8, 3, 32), jnp.float32)     # (k, C_in, n_groups)
    got = mlp_max_pallas(x_chk, w1, b1, w2, b2, out_dtype=jnp.float32)
    ref = _mlp_max_reference(x_chk, w1, b1, w2, b2)
    assert got.shape == ref.shape, (got.shape, ref.shape)
    assert jnp.allclose(got, ref, rtol=5e-2, atol=5e-2), float(jnp.max(jnp.abs(got - ref)))

    fwd = jax.jit(lambda pts, rng: pointnetpp_msg_forward(pts, CONFIG, params, rng))
    out = jax.block_until_ready(fwd(x, k_fps))
    assert out.shape == (B, CONFIG["final_mlp_layers"][-1]), out.shape
    print("KERNEL_OK")
</pallas_src>

<mosaic_0001>
module attributes {stable_mosaic.version = 11 : i64} {
  func.func @_mlp_max_kernel(%arg0: i32, %arg1: memref<8x3x128xbf16, #tpu.memory_space<vmem>>, %arg2: memref<3x16x1xf32, #tpu.memory_space<vmem>>, %arg3: memref<16x1xf32, #tpu.memory_space<vmem>>, %arg4: memref<32x16xbf16, #tpu.memory_space<vmem>>, %arg5: memref<32x1xf32, #tpu.memory_space<vmem>>, %arg6: memref<32x128xf32, #tpu.memory_space<vmem>>) attributes {dimension_semantics = [#tpu.dimension_semantics<parallel>], iteration_bounds = array<i64: 1>, scalar_prefetch = 0 : i64, scratch_operands = 0 : i64, tpu.core_type = #tpu.core_type<tc>, window_params = [{transform_indices = @transform_0, window_bounds = array<i64: 8, 3, 128>}, {pipeline_mode = #tpu.pipeline_mode<synchronous>, transform_indices = @transform_1, window_bounds = array<i64: 3, 16, 1>}, {pipeline_mode = #tpu.pipeline_mode<synchronous>, transform_indices = @transform_2, window_bounds = array<i64: 16, 1>}, {pipeline_mode = #tpu.pipeline_mode<synchronous>, transform_indices = @transform_3, window_bounds = array<i64: 32, 16>}, {pipeline_mode = #tpu.pipeline_mode<synchronous>, transform_indices = @transform_4, window_bounds = array<i64: 32, 1>}, {transform_indices = @transform_5, window_bounds = array<i64: 32, 128>}]} {
    %c0 = arith.constant 0 : index
    %c0_0 = arith.constant 0 : index
    %0 = vector.load %arg3[%c0, %c0_0] : memref<16x1xf32, #tpu.memory_space<vmem>>, vector<16x1xf32>
    %1 = vector.shape_cast %0 : vector<16x1xf32> to vector<16x1xf32>
    %2 = vector.broadcast %1 : vector<16x1xf32> to vector<16x128xf32>
    %c0_1 = arith.constant 0 : index
    %c0_2 = arith.constant 0 : index
    %3 = vector.load %arg4[%c0_1, %c0_2] : memref<32x16xbf16, #tpu.memory_space<vmem>>, vector<32x16xbf16>
    %c0_3 = arith.constant 0 : index
    %c0_4 = arith.constant 0 : index
    %c0_5 = arith.constant 0 : index
    %4 = vector.load %arg2[%c0_3, %c0_4, %c0_5] : memref<3x16x1xf32, #tpu.memory_space<vmem>>, vector<1x16x1xf32>
    %5 = vector.shape_cast %4 : vector<1x16x1xf32> to vector<16x1xf32>
    %6 = vector.shape_cast %5 : vector<16x1xf32> to vector<16x1xf32>
    %7 = vector.broadcast %6 : vector<16x1xf32> to vector<16x128xf32>
    %c1 = arith.constant 1 : index
    %c0_6 = arith.constant 0 : index
    %c0_7 = arith.constant 0 : index
    %8 = vector.load %arg2[%c1, %c0_6, %c0_7] : memref<3x16x1xf32, #tpu.memory_space<vmem>>, vector<1x16x1xf32>
    %9 = vector.shape_cast %8 : vector<1x16x1xf32> to vector<16x1xf32>
    %10 = vector.shape_cast %9 : vector<16x1xf32> to vector<16x1xf32>
    %11 = vector.broadcast %10 : vector<16x1xf32> to vector<16x128xf32>
    %c2 = arith.constant 2 : index
    %c0_8 = arith.constant 0 : index
    %c0_9 = arith.constant 0 : index
    %12 = vector.load %arg2[%c2, %c0_8, %c0_9] : memref<3x16x1xf32, #tpu.memory_space<vmem>>, vector<1x16x1xf32>
    %13 = vector.shape_cast %12 : vector<1x16x1xf32> to vector<16x1xf32>
    %14 = vector.shape_cast %13 : vector<16x1xf32> to vector<16x1xf32>
    %15 = vector.broadcast %14 : vector<16x1xf32> to vector<16x128xf32>
    %cst = arith.constant 0xFF800000 : f32
    %16 = vector.broadcast %cst : f32 to vector<32x128xf32>
    %c0_i32 = arith.constant 0 : i32
    %17 = arith.index_cast %c0_i32 : i32 to index
    %c0_10 = arith.constant 0 : index
    %c0_11 = arith.constant 0 : index
    %18 = vector.load %arg1[%17, %c0_10, %c0_11] : memref<8x3x128xbf16, #tpu.memory_space<vmem>>, vector<1x3x128xbf16>
    %19 = vector.shape_cast %18 : vector<1x3x128xbf16> to vector<3x128xbf16>
    %20 = arith.extf %19 : vector<3x128xbf16> to vector<3x128xf32>
    %21 = vector.extract_strided_slice %20 {offsets = [0, 0], sizes = [1, 128], strides = [1, 1]} : vector<3x128xf32> to vector<1x128xf32>
    %22 = vector.broadcast %21 : vector<1x128xf32> to vector<16x128xf32>
    %23 = arith.mulf %22, %7 : vector<16x128xf32>
    %24 = arith.addf %2, %23 : vector<16x128xf32>
    %25 = vector.extract_strided_slice %20 {offsets = [1, 0], sizes = [1, 128], strides = [1, 1]} : vector<3x128xf32> to vector<1x128xf32>
    %26 = vector.broadcast %25 : vector<1x128xf32> to vector<16x128xf32>
    %27 = arith.mulf %26, %11 : vector<16x128xf32>
    %28 = arith.addf %24, %27 : vector<16x128xf32>
    %29 = vector.extract_strided_slice %20 {offsets = [2, 0], sizes = [1, 128], strides = [1, 1]} : vector<3x128xf32> to vector<1x128xf32>
    %30 = vector.broadcast %29 : vector<1x128xf32> to vector<16x128xf32>
    %31 = arith.mulf %30, %15 : vector<16x128xf32>
    %32 = arith.addf %28, %31 : vector<16x128xf32>
    %cst_12 = arith.constant 0.000000e+00 : f32
    %33 = vector.broadcast %cst_12 : f32 to vector<16x128xf32>
    %34 = arith.maximumf %32, %33 : vector<16x128xf32>
    %35 = arith.truncf %34 : vector<16x128xf32> to vector<16x128xbf16>
    %cst_13 = arith.constant dense<0.000000e+00> : vector<32x128xf32>
    %36 = tpu.matmul %3, %35, %cst_13 {dimension_numbers = #tpu.dot_dimension_numbers<[1], [0], [0], [1], [0, 0, 1, 1], [], []>} : vector<32x16xbf16>, vector<16x128xbf16>, vector<32x128xf32> -> vector<32x128xf32>
    %37 = arith.maximumf %16, %36 : vector<32x128xf32>
    %c1_i32 = arith.constant 1 : i32
    %38 = arith.index_cast %c1_i32 : i32 to index
    %c0_14 = arith.constant 0 : index
    %c0_15 = arith.constant 0 : index
    %39 = vector.load %arg1[%38, %c0_14, %c0_15] : memref<8x3x128xbf16, #tpu.memory_space<vmem>>, vector<1x3x128xbf16>
    %40 = vector.shape_cast %39 : vector<1x3x128xbf16> to vector<3x128xbf16>
    %41 = arith.extf %40 : vector<3x128xbf16> to vector<3x128xf32>
    %42 = vector.extract_strided_slice %41 {offsets = [0, 0], sizes = [1, 128], strides = [1, 1]} : vector<3x128xf32> to vector<1x128xf32>
    %43 = vector.broadcast %42 : vector<1x128xf32> to vector<16x128xf32>
    %44 = arith.mulf %43, %7 : vector<16x128xf32>
    %45 = arith.addf %2, %44 : vector<16x128xf32>
    %46 = vector.extract_strided_slice %41 {offsets = [1, 0], sizes = [1, 128], strides = [1, 1]} : vector<3x128xf32> to vector<1x128xf32>
    %47 = vector.broadcast %46 : vector<1x128xf32> to vector<16x128xf32>
    %48 = arith.mulf %47, %11 : vector<16x128xf32>
    %49 = arith.addf %45, %48 : vector<16x128xf32>
    %50 = vector.extract_strided_slice %41 {offsets = [2, 0], sizes = [1, 128], strides = [1, 1]} : vector<3x128xf32> to vector<1x128xf32>
    %51 = vector.broadcast %50 : vector<1x128xf32> to vector<16x128xf32>
    %52 = arith.mulf %51, %15 : vector<16x128xf32>
    %53 = arith.addf %49, %52 : vector<16x128xf32>
    %cst_16 = arith.constant 0.000000e+00 : f32
    %54 = vector.broadcast %cst_16 : f32 to vector<16x128xf32>
    %55 = arith.maximumf %53, %54 : vector<16x128xf32>
    %56 = arith.truncf %55 : vector<16x128xf32> to vector<16x128xbf16>
    %cst_17 = arith.constant dense<0.000000e+00> : vector<32x128xf32>
    %57 = tpu.matmul %3, %56, %cst_17 {dimension_numbers = #tpu.dot_dimension_numbers<[1], [0], [0], [1], [0, 0, 1, 1], [], []>} : vector<32x16xbf16>, vector<16x128xbf16>, vector<32x128xf32> -> vector<32x128xf32>
    %58 = arith.maximumf %37, %57 : vector<32x128xf32>
    %c2_i32 = arith.constant 2 : i32
    %59 = arith.index_cast %c2_i32 : i32 to index
    %c0_18 = arith.constant 0 : index
    %c0_19 = arith.constant 0 : index
    %60 = vector.load %arg1[%59, %c0_18, %c0_19] : memref<8x3x128xbf16, #tpu.memory_space<vmem>>, vector<1x3x128xbf16>
    %61 = vector.shape_cast %60 : vector<1x3x128xbf16> to vector<3x128xbf16>
    %62 = arith.extf %61 : vector<3x128xbf16> to vector<3x128xf32>
    %63 = vector.extract_strided_slice %62 {offsets = [0, 0], sizes = [1, 128], strides = [1, 1]} : vector<3x128xf32> to vector<1x128xf32>
    %64 = vector.broadcast %63 : vector<1x128xf32> to vector<16x128xf32>
    %65 = arith.mulf %64, %7 : vector<16x128xf32>
    %66 = arith.addf %2, %65 : vector<16x128xf32>
    %67 = vector.extract_strided_slice %62 {offsets = [1, 0], sizes = [1, 128], strides = [1, 1]} : vector<3x128xf32> to vector<1x128xf32>
    %68 = vector.broadcast %67 : vector<1x128xf32> to vector<16x128xf32>
    %69 = arith.mulf %68, %11 : vector<16x128xf32>
    %70 = arith.addf %66, %69 : vector<16x128xf32>
    %71 = vector.extract_strided_slice %62 {offsets = [2, 0], sizes = [1, 128], strides = [1, 1]} : vector<3x128xf32> to vector<1x128xf32>
    %72 = vector.broadcast %71 : vector<1x128xf32> to vector<16x128xf32>
    %73 = arith.mulf %72, %15 : vector<16x128xf32>
    %74 = arith.addf %70, %73 : vector<16x128xf32>
    %cst_20 = arith.constant 0.000000e+00 : f32
    %75 = vector.broadcast %cst_20 : f32 to vector<16x128xf32>
    %76 = arith.maximumf %74, %75 : vector<16x128xf32>
    %77 = arith.truncf %76 : vector<16x128xf32> to vector<16x128xbf16>
    %cst_21 = arith.constant dense<0.000000e+00> : vector<32x128xf32>
    %78 = tpu.matmul %3, %77, %cst_21 {dimension_numbers = #tpu.dot_dimension_numbers<[1], [0], [0], [1], [0, 0, 1, 1], [], []>} : vector<32x16xbf16>, vector<16x128xbf16>, vector<32x128xf32> -> vector<32x128xf32>
    %79 = arith.maximumf %58, %78 : vector<32x128xf32>
    %c3_i32 = arith.constant 3 : i32
    %80 = arith.index_cast %c3_i32 : i32 to index
    %c0_22 = arith.constant 0 : index
    %c0_23 = arith.constant 0 : index
    %81 = vector.load %arg1[%80, %c0_22, %c0_23] : memref<8x3x128xbf16, #tpu.memory_space<vmem>>, vector<1x3x128xbf16>
    %82 = vector.shape_cast %81 : vector<1x3x128xbf16> to vector<3x128xbf16>
    %83 = arith.extf %82 : vector<3x128xbf16> to vector<3x128xf32>
    %84 = vector.extract_strided_slice %83 {offsets = [0, 0], sizes = [1, 128], strides = [1, 1]} : vector<3x128xf32> to vector<1x128xf32>
    %85 = vector.broadcast %84 : vector<1x128xf32> to vector<16x128xf32>
    %86 = arith.mulf %85, %7 : vector<16x128xf32>
    %87 = arith.addf %2, %86 : vector<16x128xf32>
    %88 = vector.extract_strided_slice %83 {offsets = [1, 0], sizes = [1, 128], strides = [1, 1]} : vector<3x128xf32> to vector<1x128xf32>
    %89 = vector.broadcast %88 : vector<1x128xf32> to vector<16x128xf32>
    %90 = arith.mulf %89, %11 : vector<16x128xf32>
    %91 = arith.addf %87, %90 : vector<16x128xf32>
    %92 = vector.extract_strided_slice %83 {offsets = [2, 0], sizes = [1, 128], strides = [1, 1]} : vector<3x128xf32> to vector<1x128xf32>
    %93 = vector.broadcast %92 : vector<1x128xf32> to vector<16x128xf32>
    %94 = arith.mulf %93, %15 : vector<16x128xf32>
    %95 = arith.addf %91, %94 : vector<16x128xf32>
    %cst_24 = arith.constant 0.000000e+00 : f32
    %96 = vector.broadcast %cst_24 : f32 to vector<16x128xf32>
    %97 = arith.maximumf %95, %96 : vector<16x128xf32>
    %98 = arith.truncf %97 : vector<16x128xf32> to vector<16x128xbf16>
    %cst_25 = arith.constant dense<0.000000e+00> : vector<32x128xf32>
    %99 = tpu.matmul %3, %98, %cst_25 {dimension_numbers = #tpu.dot_dimension_numbers<[1], [0], [0], [1], [0, 0, 1, 1], [], []>} : vector<32x16xbf16>, vector<16x128xbf16>, vector<32x128xf32> -> vector<32x128xf32>
    %100 = arith.maximumf %79, %99 : vector<32x128xf32>
    %c4_i32 = arith.constant 4 : i32
    %101 = arith.index_cast %c4_i32 : i32 to index
    %c0_26 = arith.constant 0 : index
    %c0_27 = arith.constant 0 : index
    %102 = vector.load %arg1[%101, %c0_26, %c0_27] : memref<8x3x128xbf16, #tpu.memory_space<vmem>>, vector<1x3x128xbf16>
    %103 = vector.shape_cast %102 : vector<1x3x128xbf16> to vector<3x128xbf16>
    %104 = arith.extf %103 : vector<3x128xbf16> to vector<3x128xf32>
    %105 = vector.extract_strided_slice %104 {offsets = [0, 0], sizes = [1, 128], strides = [1, 1]} : vector<3x128xf32> to vector<1x128xf32>
    %106 = vector.broadcast %105 : vector<1x128xf32> to vector<16x128xf32>
    %107 = arith.mulf %106, %7 : vector<16x128xf32>
    %108 = arith.addf %2, %107 : vector<16x128xf32>
    %109 = vector.extract_strided_slice %104 {offsets = [1, 0], sizes = [1, 128], strides = [1, 1]} : vector<3x128xf32> to vector<1x128xf32>
    %110 = vector.broadcast %109 : vector<1x128xf32> to vector<16x128xf32>
    %111 = arith.mulf %110, %11 : vector<16x128xf32>
    %112 = arith.addf %108, %111 : vector<16x128xf32>
    %113 = vector.extract_strided_slice %104 {offsets = [2, 0], sizes = [1, 128], strides = [1, 1]} : vector<3x128xf32> to vector<1x128xf32>
    %114 = vector.broadcast %113 : vector<1x128xf32> to vector<16x128xf32>
    %115 = arith.mulf %114, %15 : vector<16x128xf32>
    %116 = arith.addf %112, %115 : vector<16x128xf32>
    %cst_28 = arith.constant 0.000000e+00 : f32
    %117 = vector.broadcast %cst_28 : f32 to vector<16x128xf32>
    %118 = arith.maximumf %116, %117 : vector<16x128xf32>
    %119 = arith.truncf %118 : vector<16x128xf32> to vector<16x128xbf16>
    %cst_29 = arith.constant dense<0.000000e+00> : vector<32x128xf32>
    %120 = tpu.matmul %3, %119, %cst_29 {dimension_numbers = #tpu.dot_dimension_numbers<[1], [0], [0], [1], [0, 0, 1, 1], [], []>} : vector<32x16xbf16>, vector<16x128xbf16>, vector<32x128xf32> -> vector<32x128xf32>
    %121 = arith.maximumf %100, %120 : vector<32x128xf32>
    %c5_i32 = arith.constant 5 : i32
    %122 = arith.index_cast %c5_i32 : i32 to index
    %c0_30 = arith.constant 0 : index
    %c0_31 = arith.constant 0 : index
    %123 = vector.load %arg1[%122, %c0_30, %c0_31] : memref<8x3x128xbf16, #tpu.memory_space<vmem>>, vector<1x3x128xbf16>
    %124 = vector.shape_cast %123 : vector<1x3x128xbf16> to vector<3x128xbf16>
    %125 = arith.extf %124 : vector<3x128xbf16> to vector<3x128xf32>
    %126 = vector.extract_strided_slice %125 {offsets = [0, 0], sizes = [1, 128], strides = [1, 1]} : vector<3x128xf32> to vector<1x128xf32>
    %127 = vector.broadcast %126 : vector<1x128xf32> to vector<16x128xf32>
    %128 = arith.mulf %127, %7 : vector<16x128xf32>
    %129 = arith.addf %2, %128 : vector<16x128xf32>
    %130 = vector.extract_strided_slice %125 {offsets = [1, 0], sizes = [1, 128], strides = [1, 1]} : vector<3x128xf32> to vector<1x128xf32>
    %131 = vector.broadcast %130 : vector<1x128xf32> to vector<16x128xf32>
    %132 = arith.mulf %131, %11 : vector<16x128xf32>
    %133 = arith.addf %129, %132 : vector<16x128xf32>
    %134 = vector.extract_strided_slice %125 {offsets = [2, 0], sizes = [1, 128], strides = [1, 1]} : vector<3x128xf32> to vector<1x128xf32>
    %135 = vector.broadcast %134 : vector<1x128xf32> to vector<16x128xf32>
    %136 = arith.mulf %135, %15 : vector<16x128xf32>
    %137 = arith.addf %133, %136 : vector<16x128xf32>
    %cst_32 = arith.constant 0.000000e+00 : f32
    %138 = vector.broadcast %cst_32 : f32 to vector<16x128xf32>
    %139 = arith.maximumf %137, %138 : vector<16x128xf32>
    %140 = arith.truncf %139 : vector<16x128xf32> to vector<16x128xbf16>
    %cst_33 = arith.constant dense<0.000000e+00> : vector<32x128xf32>
    %141 = tpu.matmul %3, %140, %cst_33 {dimension_numbers = #tpu.dot_dimension_numbers<[1], [0], [0], [1], [0, 0, 1, 1], [], []>} : vector<32x16xbf16>, vector<16x128xbf16>, vector<32x128xf32> -> vector<32x128xf32>
    %142 = arith.maximumf %121, %141 : vector<32x128xf32>
    %c6_i32 = arith.constant 6 : i32
    %143 = arith.index_cast %c6_i32 : i32 to index
    %c0_34 = arith.constant 0 : index
    %c0_35 = arith.constant 0 : index
    %144 = vector.load %arg1[%143, %c0_34, %c0_35] : memref<8x3x128xbf16, #tpu.memory_space<vmem>>, vector<1x3x128xbf16>
    %145 = vector.shape_cast %144 : vector<1x3x128xbf16> to vector<3x128xbf16>
    %146 = arith.extf %145 : vector<3x128xbf16> to vector<3x128xf32>
    %147 = vector.extract_strided_slice %146 {offsets = [0, 0], sizes = [1, 128], strides = [1, 1]} : vector<3x128xf32> to vector<1x128xf32>
    %148 = vector.broadcast %147 : vector<1x128xf32> to vector<16x128xf32>
    %149 = arith.mulf %148, %7 : vector<16x128xf32>
    %150 = arith.addf %2, %149 : vector<16x128xf32>
    %151 = vector.extract_strided_slice %146 {offsets = [1, 0], sizes = [1, 128], strides = [1, 1]} : vector<3x128xf32> to vector<1x128xf32>
    %152 = vector.broadcast %151 : vector<1x128xf32> to vector<16x128xf32>
    %153 = arith.mulf %152, %11 : vector<16x128xf32>
    %154 = arith.addf %150, %153 : vector<16x128xf32>
    %155 = vector.extract_strided_slice %146 {offsets = [2, 0], sizes = [1, 128], strides = [1, 1]} : vector<3x128xf32> to vector<1x128xf32>
    %156 = vector.broadcast %155 : vector<1x128xf32> to vector<16x128xf32>
    %157 = arith.mulf %156, %15 : vector<16x128xf32>
    %158 = arith.addf %154, %157 : vector<16x128xf32>
    %cst_36 = arith.constant 0.000000e+00 : f32
    %159 = vector.broadcast %cst_36 : f32 to vector<16x128xf32>
    %160 = arith.maximumf %158, %159 : vector<16x128xf32>
    %161 = arith.truncf %160 : vector<16x128xf32> to vector<16x128xbf16>
    %cst_37 = arith.constant dense<0.000000e+00> : vector<32x128xf32>
    %162 = tpu.matmul %3, %161, %cst_37 {dimension_numbers = #tpu.dot_dimension_numbers<[1], [0], [0], [1], [0, 0, 1, 1], [], []>} : vector<32x16xbf16>, vector<16x128xbf16>, vector<32x128xf32> -> vector<32x128xf32>
    %163 = arith.maximumf %142, %162 : vector<32x128xf32>
    %c7_i32 = arith.constant 7 : i32
    %164 = arith.index_cast %c7_i32 : i32 to index
    %c0_38 = arith.constant 0 : index
    %c0_39 = arith.constant 0 : index
    %165 = vector.load %arg1[%164, %c0_38, %c0_39] : memref<8x3x128xbf16, #tpu.memory_space<vmem>>, vector<1x3x128xbf16>
    %166 = vector.shape_cast %165 : vector<1x3x128xbf16> to vector<3x128xbf16>
    %167 = arith.extf %166 : vector<3x128xbf16> to vector<3x128xf32>
    %168 = vector.extract_strided_slice %167 {offsets = [0, 0], sizes = [1, 128], strides = [1, 1]} : vector<3x128xf32> to vector<1x128xf32>
    %169 = vector.broadcast %168 : vector<1x128xf32> to vector<16x128xf32>
    %170 = arith.mulf %169, %7 : vector<16x128xf32>
    %171 = arith.addf %2, %170 : vector<16x128xf32>
    %172 = vector.extract_strided_slice %167 {offsets = [1, 0], sizes = [1, 128], strides = [1, 1]} : vector<3x128xf32> to vector<1x128xf32>
    %173 = vector.broadcast %172 : vector<1x128xf32> to vector<16x128xf32>
    %174 = arith.mulf %173, %11 : vector<16x128xf32>
    %175 = arith.addf %171, %174 : vector<16x128xf32>
    %176 = vector.extract_strided_slice %167 {offsets = [2, 0], sizes = [1, 128], strides = [1, 1]} : vector<3x128xf32> to vector<1x128xf32>
    %177 = vector.broadcast %176 : vector<1x128xf32> to vector<16x128xf32>
    %178 = arith.mulf %177, %15 : vector<16x128xf32>
    %179 = arith.addf %175, %178 : vector<16x128xf32>
    %cst_40 = arith.constant 0.000000e+00 : f32
    %180 = vector.broadcast %cst_40 : f32 to vector<16x128xf32>
    %181 = arith.maximumf %179, %180 : vector<16x128xf32>
    %182 = arith.truncf %181 : vector<16x128xf32> to vector<16x128xbf16>
    %cst_41 = arith.constant dense<0.000000e+00> : vector<32x128xf32>
    %183 = tpu.matmul %3, %182, %cst_41 {dimension_numbers = #tpu.dot_dimension_numbers<[1], [0], [0], [1], [0, 0, 1, 1], [], []>} : vector<32x16xbf16>, vector<16x128xbf16>, vector<32x128xf32> -> vector<32x128xf32>
    %184 = arith.maximumf %163, %183 : vector<32x128xf32>
    %c8_i32 = arith.constant 8 : i32
    %c0_42 = arith.constant 0 : index
    %c0_43 = arith.constant 0 : index
    %185 = vector.load %arg5[%c0_42, %c0_43] : memref<32x1xf32, #tpu.memory_space<vmem>>, vector<32x1xf32>
    %186 = vector.broadcast %185 : vector<32x1xf32> to vector<32x128xf32>
    %187 = arith.addf %184, %186 : vector<32x128xf32>
    %cst_44 = arith.constant 0.000000e+00 : f32
    %188 = vector.broadcast %cst_44 : f32 to vector<32x128xf32>
    %189 = arith.maximumf %187, %188 : vector<32x128xf32>
    %c0_45 = arith.constant 0 : index
    %c0_46 = arith.constant 0 : index
    %190 = vector.load %arg6[%c0_45, %c0_46] : memref<32x128xf32, #tpu.memory_space<vmem>>, vector<32x128xf32>
    tpu.vector_store %arg6[%c0_45, %c0_46], %189 {strides = array<i32>} : memref<32x128xf32, #tpu.memory_space<vmem>>, vector<32x128xf32>,
    return
  }
  func.func @transform_0(%arg0: i32) -> (i32, i32, i32) {
    %c0_i32 = arith.constant 0 : i32
    %c0_i32_0 = arith.constant 0 : i32
    %c0_i32_1 = arith.constant 0 : i32
    return %c0_i32, %c0_i32_0, %arg0 : i32, i32, i32
  }
  func.func @transform_1(%arg0: i32) -> (i32, i32, i32) {
    %c0_i32 = arith.constant 0 : i32
    %c0_i32_0 = arith.constant 0 : i32
    %c0_i32_1 = arith.constant 0 : i32
    %c0_i32_2 = arith.constant 0 : i32
    return %c0_i32, %c0_i32_0, %c0_i32_1 : i32, i32, i32
  }
  func.func @transform_2(%arg0: i32) -> (i32, i32) {
    %c0_i32 = arith.constant 0 : i32
    %c0_i32_0 = arith.constant 0 : i32
    %c0_i32_1 = arith.constant 0 : i32
    return %c0_i32, %c0_i32_0 : i32, i32
  }
  func.func @transform_3(%arg0: i32) -> (i32, i32) {
    %c0_i32 = arith.constant 0 : i32
    %c0_i32_0 = arith.constant 0 : i32
    %c0_i32_1 = arith.constant 0 : i32
    return %c0_i32, %c0_i32_0 : i32, i32
  }
  func.func @transform_4(%arg0: i32) -> (i32, i32) {
    %c0_i32 = arith.constant 0 : i32
    %c0_i32_0 = arith.constant 0 : i32
    %c0_i32_1 = arith.constant 0 : i32
    return %c0_i32, %c0_i32_0 : i32, i32
  }
  func.func @transform_5(%arg0: i32) -> (i32, i32) {
    %c0_i32 = arith.constant 0 : i32
    %c0_i32_0 = arith.constant 0 : i32
    return %c0_i32, %arg0 : i32, i32
  }
}

</mosaic_0001>

<bundles_post_ra>
// kernel: tpu_custom_call.1
= control target key start
LH: loop header
LB: loop body
LE: loop exit
PB: predicated region body
PF: predicated region fallthrough
CT: control target
= control target key end

     0   :  { %v564_v2 = vmov 0   ;;  %s758_s0 = inlined_call_operand.vmem [shape: bf16[8,3,128], index: 0, kind: input, shape index: {}]   ;;  %s759_s1 = inlined_call_operand.vmem [shape: f32[3,16,1], index: 1, kind: input, shape index: {}]   ;;  %s760_s2 = inlined_call_operand.vmem [shape: f32[16,1], index: 2, kind: input, shape index: {}]   ;;  %s761_s3 = inlined_call_operand.vmem [shape: bf16[32,16], index: 3, kind: input, shape index: {}]   ;;  %s762_s4 = inlined_call_operand.vmem [shape: f32[32,1], index: 4, kind: input, shape index: {}]   ;;  %s763_s5 = inlined_call_operand.hbm [shape: f32[32,128], index: 5, kind: output, shape index: {}]  }
   0x1   :  { %v38_v0 = vld [vmem:[%s759_s1] sm:$0xff]  ;;  %536 = vset.pattern.permute.xlu1 %v564_v2  ;;  %535 = vset.pattern.permute.xlu0 %v564_v2  ;;  %v494_v3 = vld [vmem:[%s759_s1 + $0x10] sm:$0xff] }
   0x2   :  { %v22_v1 = vld [vmem:[%s760_s2] sm:$0xff]  ;;  %42 = vperm.xlu0 %535, %v38_v0   ;;  %537 = vset.pattern.permute.xlu2 %v564_v2 }
   0x3   :  { %26 = vperm.xlu1 %536, %v22_v1   ;;  %55 = vperm.xlu2 %537, %v494_v3  }
   0x4   :  { %10 = vsyncpa [#allocation3], 0  ;;  %v39_v4 = vld [vmem:[%s759_s1 + $0x8] sm:$0xff]  ;;  %v495_v6 = vld [vmem:[%s759_s1 + $0x18] sm:$0xff]  ;;  %vm106_vm0 = vcmask 130048   ;;  %s566_s11 = smov 128  }
   0x5   :  { %v23_v5 = vld [vmem:[%s760_s2 + $0x8] sm:$0xff]  ;;  %v496_v7 = vld [vmem:[%s759_s1 + $0x20] sm:$0xff]  ;;  %v442_v11 = vld [vmem:[%s762_s4 + $0x10] sm:$0xff]  ;;  %s482_s2 = sshll.u32 %s763_s5, 4  ;;  %s567_s12 = smov 8   ;;  %s483_s2 = int_to_ptr.hbm [resolvable:$true] %s482_s2 }
   0x6   :  { %v497_v8 = vld [vmem:[%s759_s1 + $0x28] sm:$0xff]  ;;  %v440_v9 = vld [vmem:[%s762_s4] sm:$0xff]  ;;  %v443_v12 = vld [vmem:[%s762_s4 + $0x18] sm:$0xff] }
   0x7   :  { %v441_v10 = vld [vmem:[%s762_s4 + $0x8] sm:$0xff]  ;;  %v76_v13 = vld [vmem:[%s758_s0] sm:$0x3]  ;;  %v508_v14 = vld [vmem:[%s758_s0 + $0x2] sm:$0x3] }
   0x8   :  { %v511_v15 = vld [vmem:[%s758_s0 + $0x4] sm:$0x3]  ;;  %v514_v16 = vld [vmem:[%s758_s0 + $0x6] sm:$0x3]  ;;  %v517_v17 = vld [vmem:[%s758_s0 + $0x8] sm:$0x3]  ;;  %v658_v22 = vunpack.c.l.bf16 %v76_v13  ;;  %v660_v23 = vunpack.c.l.bf16 %v508_v14 }
   0x9   :  { %v520_v19 = vld [vmem:[%s758_s0 + $0xa] sm:$0x3]  ;;  %v523_v20 = vld [vmem:[%s758_s0 + $0xc] sm:$0x3]  ;;  %v526_v21 = vld [vmem:[%s758_s0 + $0xe] sm:$0x3]  ;;  %v662_v24 = vunpack.c.l.bf16 %v511_v15  ;;  %v664_v25 = vunpack.c.l.bf16 %v514_v16  ;;  %v666_v26 = vunpack.c.l.bf16 %v517_v17 }
   0xa   :  { %47 = vperm.xlu0 %535, %v39_v4   ;;  %v668_v27 = vunpack.c.l.bf16 %v520_v19  ;;  %v670_v28 = vunpack.c.l.bf16 %v523_v20  ;;  %v672_v29 = vunpack.c.l.bf16 %v526_v21  ;;  %v83_v30 = vperm.slane %v658_v22, 1 }
   0xb   :  { %31 = vperm.xlu1 %536, %v23_v5   ;;  %60 = vperm.xlu2 %537, %v495_v6   ;;  %v140_v31 = vperm.slane %v660_v23, 1  ;;  %v184_v32 = vperm.slane %v662_v24, 1  ;;  %v228_v33 = vperm.slane %v664_v25, 1  ;;  %v272_v34 = vperm.slane %v666_v26, 1 }
   0xc   :  { %v316_v35 = vperm.slane %v668_v27, 1  ;;  %v360_v36 = vperm.slane %v670_v28, 1  ;;  %v404_v37 = vperm.slane %v672_v29, 1  ;;  %v78_v38 = vperm.slane %v658_v22, 0 }
   0xd   :  { %v135_v39 = vperm.slane %v660_v23, 0  ;;  %v179_v40 = vperm.slane %v662_v24, 0  ;;  %v223_v41 = vperm.slane %v664_v25, 0  ;;  %v267_v42 = vperm.slane %v666_v26, 0 }
   0xe   :  { %v311_v43 = vperm.slane %v668_v27, 0  ;;  %v355_v44 = vperm.slane %v670_v28, 0  ;;  %v399_v45 = vperm.slane %v672_v29, 0  ;;  %v88_v57 = vperm.slane %v658_v22, 2 }
  0x12   :  { %68 = vperm.xlu0 %535, %v496_v7  }
  0x13   :  { %73 = vperm.xlu1 %536, %v497_v8   ;;  %446 = vperm.xlu2 %537, %v440_v9  }
  0x1a   :  { %451 = vperm.xlu0 %535, %v441_v10  }
  0x1b   :  { %456 = vperm.xlu1 %536, %v442_v11   ;;  %461 = vperm.xlu2 %537, %v443_v12  }
  0x5d   :  { %v56_v18 = vpop.permute.xlu2 %55 }
  0x5e   :  { %v84_v46 = vmul.f32 %v83_v30, %v56_v18  ;;  %v141_v47 = vmul.f32 %v140_v31, %v56_v18  ;;  %v185_v48 = vmul.f32 %v184_v32, %v56_v18  ;;  %v229_v49 = vmul.f32 %v228_v33, %v56_v18 }
  0x5f   :  { %v273_v52 = vmul.f32 %v272_v34, %v56_v18  ;;  %v317_v53 = vmul.f32 %v316_v35, %v56_v18  ;;  %v361_v54 = vmul.f32 %v360_v36, %v56_v18  ;;  %v405_v55 = vmul.f32 %v404_v37, %v56_v18 }
  0x65   :  { %v61_v56 = vpop.permute.xlu2 %60 }
  0x66   :  { %v85_v61 = vmul.f32 %v83_v30, %v61_v56  ;;  %v142_v62 = vmul.f32 %v140_v31, %v61_v56  ;;  %v186_v63 = vmul.f32 %v184_v32, %v61_v56  ;;  %v230_v9 = vmul.f32 %v228_v33, %v61_v56 }
  0x67   :  { %v274_v10 = vmul.f32 %v272_v34, %v61_v56  ;;  %v318_v11 = vmul.f32 %v316_v35, %v61_v56  ;;  %v362_v12 = vmul.f32 %v360_v36, %v61_v56  ;;  %v406_v15 = vmul.f32 %v404_v37, %v61_v56 }
  0x74   :  { %v43_v50 = vpop.permute.xlu0 %42 }
  0x75   :  { %v27_v51 = vpop.permute.xlu1 %26  ;;  %v79_v1 = vmul.f32 %v78_v38, %v43_v50  ;;  %v136_v2 = vmul.f32 %v135_v39, %v43_v50  ;;  %v180_v3 = vmul.f32 %v179_v40, %v43_v50  ;;  %v224_v4 = vmul.f32 %v223_v41, %v43_v50 }
  0x76   :  { %v268_v5 = vmul.f32 %v267_v42, %v43_v50  ;;  %v312_v6 = vmul.f32 %v311_v43, %v43_v50  ;;  %v356_v7 = vmul.f32 %v355_v44, %v43_v50  ;;  %v400_v8 = vmul.f32 %v399_v45, %v43_v50 }
  0x77   :  { %v81_v17 = vadd.f32 %v79_v1, %v27_v51  ;;  %v138_v18 = vadd.f32 %v136_v2, %v27_v51  ;;  %v182_v19 = vadd.f32 %v180_v3, %v27_v51  ;;  %v226_v20 = vadd.f32 %v224_v4, %v27_v51 }
  0x78   :  { %v270_v31 = vadd.f32 %v268_v5, %v27_v51  ;;  %v314_v32 = vadd.f32 %v312_v6, %v27_v51  ;;  %v358_v50 = vadd.f32 %v356_v7, %v27_v51  ;;  %v402_v33 = vadd.f32 %v400_v8, %v27_v51 }
  0x79   :  { %v86_v5 = vadd.f32 %v84_v46, %v81_v17  ;;  %v143_v6 = vadd.f32 %v141_v47, %v138_v18  ;;  %v187_v7 = vadd.f32 %v185_v48, %v182_v19  ;;  %v231_v51 = vadd.f32 %v229_v49, %v226_v20 }
  0x7a   :  { %v764_v48 = vperm.slane %v660_v23, 2 }
  0x7c   :  { %v48_v21 = vpop.permute.xlu0 %47 }
  0x7d   :  { %v32_v30 = vpop.permute.xlu1 %31  ;;  %v80_v34 = vmul.f32 %v78_v38, %v48_v21  ;;  %v137_v35 = vmul.f32 %v135_v39, %v48_v21  ;;  %v181_v36 = vmul.f32 %v179_v40, %v48_v21  ;;  %v225_v0 = vmul.f32 %v223_v41, %v48_v21 }
  0x7e   :  { %v269_v13 = vmul.f32 %v267_v42, %v48_v21  ;;  %v313_v60 = vmul.f32 %v311_v43, %v48_v21  ;;  %v357_v14 = vmul.f32 %v355_v44, %v48_v21  ;;  %v401_v37 = vmul.f32 %v399_v45, %v48_v21 }
  0x7f   :  { %v82_v56 = vadd.f32 %v80_v34, %v32_v30  ;;  %v139_v16 = vadd.f32 %v137_v35, %v32_v30  ;;  %v183_v1 = vadd.f32 %v181_v36, %v32_v30  ;;  %v227_v2 = vadd.f32 %v225_v0, %v32_v30 }
  0x80   :  { %v271_v3 = vadd.f32 %v269_v13, %v32_v30  ;;  %v315_v4 = vadd.f32 %v313_v60, %v32_v30  ;;  %v359_v59 = vadd.f32 %v357_v14, %v32_v30  ;;  %v403_v58 = vadd.f32 %v401_v37, %v32_v30 }
  0x81   :  { %v275_v38 = vadd.f32 %v273_v52, %v270_v31  ;;  %v319_v39 = vadd.f32 %v317_v53, %v314_v32  ;;  %v363_v40 = vadd.f32 %v361_v54, %v358_v50  ;;  %v698_v41 = vadd.f32 %v405_v55, %v402_v33 }
  0x82   :  { %v87_v42 = vadd.f32 %v85_v61, %v82_v56  ;;  %v144_v43 = vadd.f32 %v142_v62, %v139_v16  ;;  %v188_v44 = vadd.f32 %v186_v63, %v183_v1  ;;  %v232_v45 = vadd.f32 %v230_v9, %v227_v2 }
  0x83   :  { %v276_v0 = vadd.f32 %v274_v10, %v271_v3  ;;  %v320_v13 = vadd.f32 %v318_v11, %v315_v4  ;;  %v364_v60 = vadd.f32 %v362_v12, %v359_v59  ;;  %v408_v14 = vadd.f32 %v406_v15, %v403_v58 }
  0x84   :  { %v69_v8 = vpop.permute.xlu0 %68  ;;  %v765_v52 = vmov %v764_v48  ;;  %v766_v54 = vperm.slane %v662_v24, 2  ;;  %v768_v58 = vperm.slane %v664_v25, 2  ;;  %v770_v25 = vperm.slane %v666_v26, 2 }
  0x85   :  { %v74_v21 = vpop.permute.xlu1 %73  ;;  %v89_v46 = vmul.f32 %v88_v57, %v69_v8  ;;  %v146_v49 = vmul.f32 %v764_v48, %v69_v8  ;;  %v772_v1 = vperm.slane %v668_v27, 2  ;;  %v776_v48 = vperm.slane %v672_v29, 2 }
  0x86   :  { %v90_v47 = vmul.f32 %v88_v57, %v74_v21  ;;  %v147_v53 = vmul.f32 %v765_v52, %v74_v21  ;;  %v190_v55 = vmul.f32 %v766_v54, %v69_v8  ;;  %v767_v61 = vmov %v766_v54 }
  0x87   :  { %v191_v62 = vmul.f32 %v767_v61, %v74_v21  ;;  %v234_v59 = vmul.f32 %v768_v58, %v69_v8  ;;  %v769_v63 = vmov %v768_v58  ;;  %v91_v22 = vadd.f32 %v89_v46, %v86_v5  ;;  %v529_v5 = vld [vmem:[%s761_s3] sm:$0xff] }
  0x88   :  { %v235_v9 = vmul.f32 %v769_v63, %v74_v21  ;;  %v92_v57 = vadd.f32 %v90_v47, %v87_v42  ;;  %v148_v10 = vadd.f32 %v146_v49, %v143_v6  ;;  %v149_v11 = vadd.f32 %v147_v53, %v144_v43 }
  0x89   :  { %v192_v12 = vadd.f32 %v190_v55, %v187_v7  ;;  %v193_v15 = vadd.f32 %v191_v62, %v188_v44  ;;  %v236_v23 = vadd.f32 %v234_v59, %v231_v51  ;;  %v93_v17 = vmax.f32 %v91_v22, 0.0  ;;  %v530_v62 = vld [vmem:[%s761_s3 + $0x8] sm:$0xff]  ;;  %s565_s3 = smov [#allocation2]  }
  0x8a   :  { %v237_v16 = vadd.f32 %v235_v9, %v232_v45  ;;  %v94_v18 = vmax.f32 %v92_v57, 0.0  ;;  %v150_v19 = vmax.f32 %v148_v10, 0.0  ;;  %v151_v20 = vmax.f32 %v149_v11, 0.0  ;;  %s480_s8 = sshll.u32 %s565_s3, 4  ;;  %s481_s8 = int_to_ptr.vmem [resolvable:$true] %s480_s8 }
  0x8b   :  { %v194_v24 = vmax.f32 %v192_v12, 0.0  ;;  %v195_v30 = vmax.f32 %v193_v15, 0.0  ;;  %v238_v31 = vmax.f32 %v236_v23, 0.0  ;;  %v278_v34 = vmul.f32 %v770_v25, %v69_v8 }
  0x8c   :  { %v239_v32 = vmax.f32 %v237_v16, 0.0  ;;  %v95_v50 = vpack.c.bf16 %v94_v18, %v93_v17  ;;  %v152_v33 = vpack.c.bf16 %v151_v20, %v150_v19  ;;  %v771_v35 = vmov %v770_v25 }
  0x8d   :  { %v279_v36 = vmul.f32 %v771_v35, %v74_v21  ;;  %v196_v37 = vpack.c.bf16 %v195_v30, %v194_v24  ;;  %v322_v2 = vmul.f32 %v772_v1, %v69_v8  ;;  %v773_v3 = vmov %v772_v1 }
  0x8e   :  { %v240_v56 = vpack.c.bf16 %v239_v32, %v238_v31  ;;  %v323_v4 = vmul.f32 %v773_v3, %v74_v21  ;;  %120 = vmatpush.bf16.msra.mxu0 %v95_v50  ;;  %160 = vmatpush.bf16.msra.mxu1 %v152_v33  ;;  %v280_v6 = vadd.f32 %v278_v34, %v275_v38  ;;  %v774_v51 = vperm.slane %v670_v28, 2 }
  0x8f   :  { %v281_v7 = vadd.f32 %v279_v36, %v276_v0  ;;  %204 = vmatpush.bf16.msra.mxu2 %v196_v37  ;;  %v324_v42 = vadd.f32 %v322_v2, %v319_v39  ;;  %v410_v49 = vmul.f32 %v776_v48, %v69_v8  ;;  %v777_v53 = vmov %v776_v48 }
  0x90   :  { %v366_v26 = vmul.f32 %v774_v51, %v69_v8  ;;  %248 = vmatpush.bf16.msra.mxu3 %v240_v56  ;;  %v325_v43 = vadd.f32 %v323_v4, %v320_v13  ;;  %v775_v44 = vmov %v774_v51  ;;  %v282_v45 = vmax.f32 %v280_v6, 0.0 }
  0x91   :  { %v367_v27 = vmul.f32 %v775_v44, %v74_v21  ;;  %v283_v46 = vmax.f32 %v281_v7, 0.0  ;;  %v326_v52 = vmax.f32 %v324_v42, 0.0  ;;  %v411_v54 = vmul.f32 %v777_v53, %v74_v21  ;;  %506 = vmatmul.msk.bf16.vlgmr.msra.gmra.mxu0 %vm106_vm0, %v529_v5  ;;  %509 = vmatmul.msk.bf16.vlgmr.msra.gmra.mxu1 %vm106_vm0, %v529_v5 }
  0x92   :  { %v368_v47 = vadd.f32 %v366_v26, %v363_v40  ;;  %v327_v38 = vmax.f32 %v325_v43, 0.0  ;;  %v412_v28 = vadd.f32 %v410_v49, %v698_v41  ;;  %512 = vmatmul.msk.bf16.vlgmr.msra.gmra.mxu2 %vm106_vm0, %v529_v5  ;;  %v452_v49 = vpop.permute.xlu0 %451 }
  0x93   :  { %v369_v0 = vadd.f32 %v367_v27, %v364_v60  ;;  %v284_v39 = vpack.c.bf16 %v283_v46, %v282_v45  ;;  %515 = vmatmul.msk.bf16.vlgmr.msra.gmra.mxu3 %vm106_vm0, %v529_v5  ;;  %v413_v55 = vadd.f32 %v411_v54, %v408_v14 }
  0x94   :  { %v370_v13 = vmax.f32 %v368_v47, 0.0  ;;  %v328_v40 = vpack.c.bf16 %v327_v38, %v326_v52  ;;  %v414_v60 = vmax.f32 %v412_v28, 0.0 }
  0x95   :  { %v371_v8 = vmax.f32 %v369_v0, 0.0  ;;  %292 = vmatpush.bf16.msrb.mxu0 %v284_v39  ;;  %v415_v21 = vmax.f32 %v413_v55, 0.0 }
  0x96   :  { %336 = vmatpush.bf16.msrb.mxu1 %v328_v40 }
  0x97   :  { %v372_v29 = vpack.c.bf16 %v371_v8, %v370_v13  ;;  %v416_v61 = vpack.c.bf16 %v415_v21, %v414_v60 }
  0x99   :  { %380 = vmatpush.bf16.msrb.mxu2 %v372_v29  ;;  %424 = vmatpush.bf16.msrb.mxu3 %v416_v61  ;;  %v457_v29 = vpop.permute.xlu1 %456 }
  0xa1   :  { %507 = vmatmul.msk.bf16.gmra.mxu0 %vm106_vm0, %v530_v62  ;;  %510 = vmatmul.msk.bf16.gmra.mxu1 %vm106_vm0, %v530_v62 }
  0xa2   :  { %513 = vmatmul.msk.bf16.gmra.mxu2 %vm106_vm0, %v530_v62 }
  0xa3   :  { %516 = vmatmul.msk.bf16.gmra.mxu3 %vm106_vm0, %v530_v62 }
  0xb1   :  { %518 = vmatmul.msk.bf16.vlgmr.msrb.gmra.mxu0 %vm106_vm0, %v529_v5  ;;  %521 = vmatmul.msk.bf16.vlgmr.msrb.gmra.mxu1 %vm106_vm0, %v529_v5 }
  0xb2   :  { %524 = vmatmul.msk.bf16.vlgmr.msrb.gmra.mxu2 %vm106_vm0, %v529_v5 }
  0xb3   :  { %527 = vmatmul.msk.bf16.vlgmr.msrb.gmra.mxu3 %vm106_vm0, %v529_v5  ;;  %v447_v5 = vpop.permute.xlu2 %446 }
  0xc1   :  { %519 = vmatmul.msk.bf16.gmra.mxu0 %vm106_vm0, %v530_v62  ;;  %522 = vmatmul.msk.bf16.gmra.mxu1 %vm106_vm0, %v530_v62 }
  0xc2   :  { %525 = vmatmul.msk.bf16.gmra.mxu2 %vm106_vm0, %v530_v62 }
  0xc3   :  { %528 = vmatmul.msk.bf16.gmra.mxu3 %vm106_vm0, %v530_v62 }
 0x10e   :  { %v122_v41 = vpop.f32.mrf.mxu0  ;;  %v162_v14 = vpop.f32.mrf.mxu1 }
 0x10f   :  { %v172_v17 = vmax.f32 %v122_v41, %v162_v14 }
 0x115   :  { %v206_v58 = vpop.f32.mrf.mxu2 }
 0x116   :  { %v250_v59 = vpop.f32.mrf.mxu3  ;;  %v124_v63 = vpop.f32.mrf.mxu0  ;;  %v216_v18 = vmax.f32 %v172_v17, %v206_v58 }
 0x117   :  { %v164_v9 = vpop.f32.mrf.mxu1 }
 0x118   :  { %v260_v24 = vmax.f32 %v216_v18, %v250_v59  ;;  %v173_v32 = vmax.f32 %v124_v63, %v164_v9  ;;  %v462_v9 = vpop.permute.xlu2 %461 }
 0x11d   :  { %v208_v22 = vpop.f32.mrf.mxu2 }
 0x11e   :  { %v252_v57 = vpop.f32.mrf.mxu3  ;;  %v127_v10 = vpop.f32.mrf.mxu0  ;;  %v217_v33 = vmax.f32 %v173_v32, %v208_v22 }
 0x11f   :  { %v167_v11 = vpop.f32.mrf.mxu1 }
 0x120   :  { %v261_v36 = vmax.f32 %v217_v33, %v252_v57  ;;  %v174_v2 = vmax.f32 %v127_v10, %v167_v11 }
 0x125   :  { %v211_v12 = vpop.f32.mrf.mxu2 }
 0x126   :  { %v255_v15 = vpop.f32.mrf.mxu3  ;;  %v129_v23 = vpop.f32.mrf.mxu0  ;;  %v218_v6 = vmax.f32 %v174_v2, %v211_v12 }
 0x127   :  { %v169_v16 = vpop.f32.mrf.mxu1 }
 0x128   :  { %v262_v44 = vmax.f32 %v218_v6, %v255_v15  ;;  %v175_v46 = vmax.f32 %v129_v23, %v169_v16 }
 0x12d   :  { %v213_v19 = vpop.f32.mrf.mxu2 }
 0x12e   :  { %v257_v20 = vpop.f32.mrf.mxu3  ;;  %v294_v30 = vpop.f32.mrf.mxu0  ;;  %v219_v38 = vmax.f32 %v175_v46, %v213_v19 }
 0x12f   :  { %v338_v31 = vpop.f32.mrf.mxu1  ;;  %v304_v50 = vmax.f32 %v260_v24, %v294_v30 }
 0x130   :  { %v263_v28 = vmax.f32 %v219_v38, %v257_v20 }
 0x131   :  { %v348_v25 = vmax.f32 %v304_v50, %v338_v31 }
 0x135   :  { %v382_v34 = vpop.f32.mrf.mxu2 }
 0x136   :  { %v426_v35 = vpop.f32.mrf.mxu3  ;;  %v392_v37 = vmax.f32 %v348_v25, %v382_v34  ;;  %v296_v56 = vpop.f32.mrf.mxu0 }
 0x137   :  { %v340_v1 = vpop.f32.mrf.mxu1  ;;  %v305_v4 = vmax.f32 %v261_v36, %v296_v56 }
 0x138   :  { %v436_v3 = vmax.f32 %v392_v37, %v426_v35 }
 0x139   :  { %v349_v26 = vmax.f32 %v305_v4, %v340_v1 }
 0x13a   :  { %v464_v7 = vadd.f32 %v447_v5, %v436_v3 }
 0x13c   :  { %v468_v51 = vmax.f32 %v464_v7, 0.0 }
 0x13d   :  { %v384_v42 = vpop.f32.mrf.mxu2 }
 0x13e   :  { %v428_v43 = vpop.f32.mrf.mxu3  ;;  %472 = vst [vmem:[#allocation2] sm:$0xff] %v468_v51  ;;  %v393_v27 = vmax.f32 %v349_v26, %v384_v42  ;;  %v299_v45 = vpop.f32.mrf.mxu0 }
 0x13f   :  { %v306_v48 = vmax.f32 %v262_v44, %v299_v45  ;;  %v343_v52 = vpop.f32.mrf.mxu1 }
 0x140   :  { %v437_v47 = vmax.f32 %v393_v27, %v428_v43 }
 0x141   :  { %v350_v54 = vmax.f32 %v306_v48, %v343_v52 }
 0x142   :  { %v465_v0 = vadd.f32 %v452_v49, %v437_v47 }
 0x144   :  { %v469_v53 = vmax.f32 %v465_v0, 0.0 }
 0x145   :  { %v387_v39 = vpop.f32.mrf.mxu2 }
 0x146   :  { %v431_v13 = vpop.f32.mrf.mxu3  ;;  %473 = vst [vmem:[#allocation2 + $0x8] sm:$0xff] %v469_v53  ;;  %v394_v40 = vmax.f32 %v350_v54, %v387_v39  ;;  %v301_v8 = vpop.f32.mrf.mxu0 }
 0x147   :  { %v307_v60 = vmax.f32 %v263_v28, %v301_v8  ;;  %v345_v61 = vpop.f32.mrf.mxu1 }
 0x148   :  { %v438_v55 = vmax.f32 %v394_v40, %v431_v13 }
 0x149   :  { %v351_v41 = vmax.f32 %v307_v60, %v345_v61 }
 0x14a   :  { %v466_v21 = vadd.f32 %v457_v29, %v438_v55 }
 0x14c   :  { %v470_v62 = vmax.f32 %v466_v21, 0.0 }
 0x14d   :  { %v389_v14 = vpop.f32.mrf.mxu2 }
 0x14e   :  { %474 = vst [vmem:[#allocation2 + $0x10] sm:$0xff] %v470_v62  ;;  %v395_v58 = vmax.f32 %v351_v41, %v389_v14  ;;  %v433_v59 = vpop.f32.mrf.mxu3 }
 0x150   :  { %v439_v63 = vmax.f32 %v395_v58, %v433_v59 }
 0x152   :  { %v467_v22 = vadd.f32 %v462_v9, %v439_v63 }
 0x154   :  { %v471_v57 = vmax.f32 %v467_v22, 0.0 }
 0x156   :  { %475 = vst [vmem:[#allocation2 + $0x18] sm:$0xff] %v471_v57 }
 0x157   :  { %488 = dma.vmem_to_hbm [thread:$0]  %s481_s8, 512, %s483_s2, [#allocation3], %s566_s11, %s566_s11, %s567_s12  }
 0x158   :  { %562 = dma.done.wait [#allocation3], 512  }
 0x159   :  { %563 = vsyncadd [#allocation3], 4294966784 }
 0x15a   :  { %493 = vsyncpa [#allocation3], 1 }

</bundles_post_ra>
